<compile_context>
chip_gen: v5e
topology: v5e:2x2
jax: 0.10.0
libtpu: 0.0.40
codegen_flags: <defaults>
</compile_context>

<pallas_src>
import functools
import math

import jax
import jax.numpy as jnp
from jax.experimental import pallas as pl
from jax.experimental.pallas import tpu as pltpu


# ------------------------------- utilities ----------------------------------

def _round_up(n, m):
    return ((n + m - 1) // m) * m


def _pick_time_tile(T, B):
    """Rows (time steps) per grid step: multiple of 8 sublanes, up to 1024 rows
    to amortize the ~0.35us per-step overhead while keeping double-buffered
    VMEM tiny. Ensure >= 2 total grid steps when possible so megacore chips
    (v7x) can split the grid across both TensorCores."""
    t8 = _round_up(T, 8)
    tile = min(t8, 1024)
    if B * ((t8 + tile - 1) // tile) < 2 and t8 >= 16:
        tile = _round_up(t8 // 2, 8)
    return tile, _round_up(T, tile)


# --------------------------------- kernel -----------------------------------

def cond_mlp_kernel(x_ref, cond_ref, w_ref, v_ref, o_ref, *, hidden):
    # x_ref:    (1, TR, CP)   bf16  input rows, lanes >= in_size are zero
    # cond_ref: (1, 3, CP)    f32   per-batch conv_1x1_condition outputs
    # w_ref:    (9, CP, CP)   bf16  pre-transposed, zero-padded weight slab
    # v_ref:    (16, CP)      f32   bias / gamma / beta slab (zero-padded lanes)
    # o_ref:    (1, TR, hidden) f32 lane-dense output
    x = x_ref[0]            # (TR, CP) bf16
    cond = cond_ref[0]      # (3, CP)  f32
    v = v_ref[...]          # (16, CP) f32
    inv_h = 1.0 / hidden

    def mm(a, widx):
        # bf16 MXU operands, f32 accumulation. Weights already (fan_in, fan_out).
        return jnp.dot(a.astype(jnp.bfloat16), w_ref[widx],
                       preferred_element_type=jnp.float32)

    def linear_stack(a, widx, vbase):
        # Linear -> LayerNorm(eps=1e-5, over the true `hidden` lanes) -> LeakyReLU(0.01)
        # Padded lanes of y are exactly 0 (zero weight cols / zero bias), so the
        # full-lane sums equal the `hidden`-lane sums; var = E[y^2] - mu^2.
        y = mm(a, widx) + v[vbase:vbase + 1]
        mu = jnp.sum(y, axis=-1, keepdims=True) * inv_h
        ms = jnp.sum(y * y, axis=-1, keepdims=True) * inv_h
        var = ms - mu * mu
        yn = (y - mu) * jax.lax.rsqrt(var + 1e-5)
        yn = yn * v[vbase + 1:vbase + 2] + v[vbase + 2:vbase + 3]   # gamma, beta
        return jnp.where(yn > 0, yn, 0.01 * yn)

    def gate(mix):
        # tanh(m)*sigmoid(m) == (1 - e) / (1 + e*e), e = exp(-m).
        # Clamp keeps exp finite for very negative mix (limit is ~0 either way).
        e = jnp.exp(-jnp.maximum(mix, -30.0))
        return (1.0 - e) * pl.reciprocal(1.0 + e * e, approx=True)

    def cond_block(h, wbase, vbase, j):
        # ConditionBlock: gated 1x1 convs + residual + LeakyReLU(0.2)
        x_in = mm(h, wbase) + v[vbase:vbase + 1]
        mix = x_in + cond[j:j + 1]
        out = mm(gate(mix), wbase + 1) + v[vbase + 1:vbase + 2] + h
        return jnp.where(out > 0, out, 0.2 * out)

    h = linear_stack(x, 0, 0)
    h = cond_block(h, 3, 9, 0)
    h = linear_stack(h, 1, 3)
    h = cond_block(h, 5, 11, 1)
    h = linear_stack(h, 2, 6)
    h = cond_block(h, 7, 13, 2)
    o_ref[0] = h[:, :hidden].astype(o_ref.dtype)


# ------------------------------ param packing -------------------------------

def init_params(key, in_size, hidden):
    """PyTorch-layout parameters: W is (out, in), biases are (out,)."""
    keys = iter(jax.random.split(key, 64))

    def lin(fan_in, fan_out):
        bound = 1.0 / math.sqrt(fan_in)
        W = jax.random.uniform(next(keys), (fan_out, fan_in),
                               minval=-bound, maxval=bound, dtype=jnp.float32)
        b = jax.random.uniform(next(keys), (fan_out,),
                               minval=-bound, maxval=bound, dtype=jnp.float32)
        return W, b

    p = {}
    for i, (fi, fo) in enumerate([(in_size, hidden), (hidden, hidden), (hidden, hidden)], 1):
        W, b = lin(fi, fo)
        p[f'ls{i}'] = (W, b, jnp.ones((fo,), jnp.float32), jnp.zeros((fo,), jnp.float32))
    for i in range(1, 4):
        Wi, bi = lin(hidden, hidden)
        Wc, bc = lin(hidden, hidden)
        Wo, bo = lin(hidden, hidden)
        p[f'cb{i}'] = (Wi, bi, Wc, bc, Wo, bo)
    return p


def pack_params(p, in_size, hidden):
    """Pack params into two lane-padded slabs + the hoisted conditioning weights."""
    cp = max(_round_up(in_size, 128), _round_up(hidden, 128))

    def pad_mat_t(W):  # (out, in) -> (cp, cp) holding W.T, so the kernel does x @ W
        Wt = W.T.astype(jnp.float32)
        return jnp.zeros((cp, cp), jnp.float32).at[:Wt.shape[0], :Wt.shape[1]].set(Wt)

    def pad_vec(vv):
        return jnp.zeros((cp,), jnp.float32).at[:vv.shape[0]].set(vv.astype(jnp.float32))

    (W1, b1, g1, be1) = p['ls1']
    (W2, b2, g2, be2) = p['ls2']
    (W3, b3, g3, be3) = p['ls3']
    cbs = [p['cb1'], p['cb2'], p['cb3']]

    # slab order: [W1, W2, W3, c1_Wi, c1_Wo, c2_Wi, c2_Wo, c3_Wi, c3_Wo]
    w_mats = [W1, W2, W3]
    for (Wi, _bi, _Wc, _bc, Wo, _bo) in cbs:
        w_mats += [Wi, Wo]
    w_slab = jnp.stack([pad_mat_t(W) for W in w_mats]).astype(jnp.bfloat16)

    # slab order: [b1,g1,be1, b2,g2,be2, b3,g3,be3, c1_bi,c1_bo, c2_bi,c2_bo, c3_bi,c3_bo, 0]
    vecs = [b1, g1, be1, b2, g2, be2, b3, g3, be3]
    for (_Wi, bi, _Wc, _bc, _Wo, bo) in cbs:
        vecs += [bi, bo]
    vecs.append(jnp.zeros((cp,), jnp.float32))
    v_slab = jnp.stack([pad_vec(vv) for vv in vecs])

    wc = jnp.stack([cb[2] for cb in cbs])  # (3, hidden, hidden), PyTorch (out, in)
    bc = jnp.stack([cb[3] for cb in cbs])  # (3, hidden)
    return dict(w_slab=w_slab, v_slab=v_slab, wc=wc, bc=bc,
                cp=cp, in_size=in_size, hidden=hidden)


# -------------------------------- wrapper -----------------------------------

def cond_mlp_forward(x, timbre_emb, packed):
    B, T, in_size = x.shape
    hidden = packed['hidden']
    cp = packed['cp']
    time_tile, T_pad = _pick_time_tile(T, B)

    # Hoist the degenerate (1, C) conditioning matmuls out of the kernel.
    # Result stays un-broadcast over time: (B, 3, CP), indexed per batch below.
    t_emb = timbre_emb[:, 0, :].astype(jnp.float32)                        # (B, H)
    cond = jnp.einsum('bi,joi->bjo', t_emb, packed['wc']) + packed['bc'][None]
    cond_pad = jnp.zeros((B, 3, cp), jnp.float32).at[:, :, :hidden].set(cond)

    # Input stored bf16 (the MXU operands were bf16 anyway) -> half the read BW.
    x_pad = jnp.zeros((B, T_pad, cp), jnp.bfloat16).at[:, :T, :in_size].set(
        x.astype(jnp.bfloat16))

    kernel = functools.partial(cond_mlp_kernel, hidden=hidden)
    out = pl.pallas_call(
        kernel,
        out_shape=jax.ShapeDtypeStruct((B, T_pad, hidden), jnp.float32),
        grid_spec=pltpu.PrefetchScalarGridSpec(
            num_scalar_prefetch=0,
            grid=(B, T_pad // time_tile),
            in_specs=[
                # activations: one batch row-tile per grid step
                pl.BlockSpec((1, time_tile, cp), lambda b, t: (b, t, 0)),
                # conditioning: depends only on the batch axis (re-DMA'd <= B times)
                pl.BlockSpec((1, 3, cp), lambda b, t: (b, 0, 0)),
                # parameter slabs: constant block index -> stay resident in VMEM
                # (single-buffering them would save ~300 KiB; left default for safety)
                pl.BlockSpec(packed['w_slab'].shape, lambda b, t: (0, 0, 0)),
                pl.BlockSpec(packed['v_slab'].shape, lambda b, t: (0, 0)),
            ],
            # lane-dense output: last dim == hidden (full dim), no post-kernel
            # column slice and 4x fewer output bytes than a CP-padded slab.
            out_specs=pl.BlockSpec((1, time_tile, hidden), lambda b, t: (b, t, 0)),
        ),
        compiler_params=pltpu.CompilerParams(
            dimension_semantics=("parallel", "parallel")),
    )(x_pad, cond_pad, packed['w_slab'], packed['v_slab'])

    return out if T_pad == T else out[:, :T]


# ---------------------------- pure-JAX reference -----------------------------

def ref_forward(x, timbre_emb, p):
    def leaky(v, s):
        return jnp.where(v > 0, v, s * v)

    def lin_stack(v, W, b, g, be):
        y = v @ W.T + b
        mu = jnp.mean(y, axis=-1, keepdims=True)
        var = jnp.mean(jnp.square(y - mu), axis=-1, keepdims=True)
        y = (y - mu) * jax.lax.rsqrt(var + 1e-5) * g + be
        return leaky(y, 0.01)

    def cond_block(v, t, Wi, bi, Wc, bc, Wo, bo):
        x_in = v @ Wi.T + bi
        x_c = t @ Wc.T + bc
        mix = x_in + x_c
        gated = jnp.tanh(mix) * jax.nn.sigmoid(mix)
        out = gated @ Wo.T + bo
        return leaky(out + v, 0.2)

    h = lin_stack(x, *p['ls1'])
    h = cond_block(h, timbre_emb, *p['cb1'])
    h = lin_stack(h, *p['ls2'])
    h = cond_block(h, timbre_emb, *p['cb2'])
    h = lin_stack(h, *p['ls3'])
    h = cond_block(h, timbre_emb, *p['cb3'])
    return h


# ----------------------------------- main ------------------------------------

if __name__ == "__main__":
    key = jax.random.PRNGKey(0)
    B, T, in_size, hidden = 2, 8, 16, 32

    kx, kt, kp = jax.random.split(key, 3)
    x = jax.random.normal(kx, (B, T, in_size), dtype=jnp.float32)
    timbre_emb = jax.random.normal(kt, (B, 1, hidden), dtype=jnp.float32)

    params = init_params(kp, in_size, hidden)
    packed = pack_params(params, in_size, hidden)

    out = cond_mlp_forward(x, timbre_emb, packed)
    jax.block_until_ready(out)

    ref = ref_forward(x, timbre_emb, params)
    assert out.shape == (B, T, hidden)
    assert bool(jnp.all(jnp.isfinite(out)))
    # bf16 MXU operands vs f32 reference -> loose tolerance
    assert bool(jnp.allclose(out, ref, atol=7e-2, rtol=7e-2)), \
        float(jnp.max(jnp.abs(out - ref)))
    print("KERNEL_OK")
</pallas_src>

<mosaic_0001>
module attributes {stable_mosaic.version = 11 : i64} {
  func.func @cond_mlp_kernel(%arg0: i32, %arg1: i32, %arg2: memref<1x8x128xbf16, #tpu.memory_space<vmem>>, %arg3: memref<1x3x128xf32, #tpu.memory_space<vmem>>, %arg4: memref<9x128x128xbf16, #tpu.memory_space<vmem>>, %arg5: memref<16x128xf32, #tpu.memory_space<vmem>>, %arg6: memref<1x8x32xf32, #tpu.memory_space<vmem>>) attributes {dimension_semantics = [#tpu.dimension_semantics<parallel>, #tpu.dimension_semantics<parallel>], iteration_bounds = array<i64: 2, 1>, scalar_prefetch = 0 : i64, scratch_operands = 0 : i64, tpu.core_type = #tpu.core_type<tc>, window_params = [{transform_indices = @transform_0, window_bounds = array<i64: 1, 8, 128>}, {transform_indices = @transform_1, window_bounds = array<i64: 1, 3, 128>}, {pipeline_mode = #tpu.pipeline_mode<synchronous>, transform_indices = @transform_2, window_bounds = array<i64: 9, 128, 128>}, {pipeline_mode = #tpu.pipeline_mode<synchronous>, transform_indices = @transform_3, window_bounds = array<i64: 16, 128>}, {transform_indices = @transform_4, window_bounds = array<i64: 1, 8, 32>}]} {
    %c0 = arith.constant 0 : index
    %c0_0 = arith.constant 0 : index
    %c0_1 = arith.constant 0 : index
    %0 = vector.load %arg2[%c0, %c0_0, %c0_1] : memref<1x8x128xbf16, #tpu.memory_space<vmem>>, vector<1x8x128xbf16>
    %1 = vector.shape_cast %0 : vector<1x8x128xbf16> to vector<8x128xbf16>
    %c0_2 = arith.constant 0 : index
    %c0_3 = arith.constant 0 : index
    %c0_4 = arith.constant 0 : index
    %2 = vector.load %arg3[%c0_2, %c0_3, %c0_4] : memref<1x3x128xf32, #tpu.memory_space<vmem>>, vector<1x3x128xf32>
    %3 = vector.shape_cast %2 : vector<1x3x128xf32> to vector<3x128xf32>
    %c0_5 = arith.constant 0 : index
    %c0_6 = arith.constant 0 : index
    %4 = vector.load %arg5[%c0_5, %c0_6] : memref<16x128xf32, #tpu.memory_space<vmem>>, vector<16x128xf32>
    %c0_7 = arith.constant 0 : index
    %c0_8 = arith.constant 0 : index
    %c0_9 = arith.constant 0 : index
    %5 = vector.load %arg4[%c0_7, %c0_8, %c0_9] : memref<9x128x128xbf16, #tpu.memory_space<vmem>>, vector<1x128x128xbf16>
    %6 = vector.shape_cast %5 : vector<1x128x128xbf16> to vector<128x128xbf16>
    %cst = arith.constant dense<0.000000e+00> : vector<8x128xf32>
    %7 = tpu.matmul %1, %6, %cst {dimension_numbers = #tpu.dot_dimension_numbers<[1], [0], [0], [1], [0, 0, 1, 1], [], []>} : vector<8x128xbf16>, vector<128x128xbf16>, vector<8x128xf32> -> vector<8x128xf32>
    %8 = vector.extract_strided_slice %4 {offsets = [0, 0], sizes = [1, 128], strides = [1, 1]} : vector<16x128xf32> to vector<1x128xf32>
    %9 = vector.broadcast %8 : vector<1x128xf32> to vector<8x128xf32>
    %10 = arith.addf %7, %9 : vector<8x128xf32>
    %cst_10 = arith.constant dense<0.000000e+00> : vector<8xf32>
    %11 = vector.multi_reduction <add>, %10, %cst_10 [1] : vector<8x128xf32> to vector<8xf32>
    %12 = vector.shape_cast %11 : vector<8xf32> to vector<8x1xf32>
    %cst_11 = arith.constant 3.125000e-02 : f32
    %13 = vector.broadcast %cst_11 : f32 to vector<8x1xf32>
    %14 = arith.mulf %12, %13 : vector<8x1xf32>
    %15 = arith.mulf %10, %10 : vector<8x128xf32>
    %cst_12 = arith.constant dense<0.000000e+00> : vector<8xf32>
    %16 = vector.multi_reduction <add>, %15, %cst_12 [1] : vector<8x128xf32> to vector<8xf32>
    %17 = vector.shape_cast %16 : vector<8xf32> to vector<8x1xf32>
    %cst_13 = arith.constant 3.125000e-02 : f32
    %18 = vector.broadcast %cst_13 : f32 to vector<8x1xf32>
    %19 = arith.mulf %17, %18 : vector<8x1xf32>
    %20 = arith.mulf %14, %14 : vector<8x1xf32>
    %21 = arith.subf %19, %20 : vector<8x1xf32>
    %22 = vector.broadcast %14 : vector<8x1xf32> to vector<8x128xf32>
    %23 = arith.subf %10, %22 : vector<8x128xf32>
    %cst_14 = arith.constant 9.99999974E-6 : f32
    %24 = vector.broadcast %cst_14 : f32 to vector<8x1xf32>
    %25 = arith.addf %21, %24 : vector<8x1xf32>
    %26 = math.rsqrt %25 : vector<8x1xf32>
    %27 = vector.broadcast %26 : vector<8x1xf32> to vector<8x128xf32>
    %28 = arith.mulf %23, %27 : vector<8x128xf32>
    %29 = vector.extract_strided_slice %4 {offsets = [1, 0], sizes = [1, 128], strides = [1, 1]} : vector<16x128xf32> to vector<1x128xf32>
    %30 = vector.broadcast %29 : vector<1x128xf32> to vector<8x128xf32>
    %31 = arith.mulf %28, %30 : vector<8x128xf32>
    %32 = vector.extract_strided_slice %4 {offsets = [2, 0], sizes = [1, 128], strides = [1, 1]} : vector<16x128xf32> to vector<1x128xf32>
    %33 = vector.broadcast %32 : vector<1x128xf32> to vector<8x128xf32>
    %34 = arith.addf %31, %33 : vector<8x128xf32>
    %cst_15 = arith.constant 0.000000e+00 : f32
    %35 = vector.broadcast %cst_15 : f32 to vector<8x128xf32>
    %36 = arith.cmpf ogt, %34, %35 : vector<8x128xf32>
    %cst_16 = arith.constant 0.00999999977 : f32
    %37 = vector.broadcast %cst_16 : f32 to vector<8x128xf32>
    %38 = arith.mulf %37, %34 : vector<8x128xf32>
    %39 = arith.select %36, %34, %38 : vector<8x128xi1>, vector<8x128xf32>
    %40 = arith.truncf %39 : vector<8x128xf32> to vector<8x128xbf16>
    %c3 = arith.constant 3 : index
    %c0_17 = arith.constant 0 : index
    %c0_18 = arith.constant 0 : index
    %41 = vector.load %arg4[%c3, %c0_17, %c0_18] : memref<9x128x128xbf16, #tpu.memory_space<vmem>>, vector<1x128x128xbf16>
    %42 = vector.shape_cast %41 : vector<1x128x128xbf16> to vector<128x128xbf16>
    %cst_19 = arith.constant dense<0.000000e+00> : vector<8x128xf32>
    %43 = tpu.matmul %40, %42, %cst_19 {dimension_numbers = #tpu.dot_dimension_numbers<[1], [0], [0], [1], [0, 0, 1, 1], [], []>} : vector<8x128xbf16>, vector<128x128xbf16>, vector<8x128xf32> -> vector<8x128xf32>
    %44 = vector.extract_strided_slice %4 {offsets = [9, 0], sizes = [1, 128], strides = [1, 1]} : vector<16x128xf32> to vector<1x128xf32>
    %45 = vector.broadcast %44 : vector<1x128xf32> to vector<8x128xf32>
    %46 = arith.addf %43, %45 : vector<8x128xf32>
    %47 = vector.extract_strided_slice %3 {offsets = [0, 0], sizes = [1, 128], strides = [1, 1]} : vector<3x128xf32> to vector<1x128xf32>
    %48 = vector.broadcast %47 : vector<1x128xf32> to vector<8x128xf32>
    %49 = arith.addf %46, %48 : vector<8x128xf32>
    %cst_20 = arith.constant -3.000000e+01 : f32
    %50 = vector.broadcast %cst_20 : f32 to vector<8x128xf32>
    %51 = arith.maximumf %49, %50 : vector<8x128xf32>
    %cst_21 = arith.constant 0.000000e+00 : f32
    %52 = vector.broadcast %cst_21 : f32 to vector<8x128xf32>
    %53 = arith.subf %52, %51 : vector<8x128xf32>
    %54 = math.exp %53 : vector<8x128xf32>
    %cst_22 = arith.constant 1.000000e+00 : f32
    %55 = vector.broadcast %cst_22 : f32 to vector<8x128xf32>
    %56 = arith.subf %55, %54 : vector<8x128xf32>
    %57 = arith.mulf %54, %54 : vector<8x128xf32>
    %cst_23 = arith.constant 1.000000e+00 : f32
    %58 = vector.broadcast %cst_23 : f32 to vector<8x128xf32>
    %59 = arith.addf %58, %57 : vector<8x128xf32>
    %60 = tpu.reciprocal %59 {approx = true} : vector<8x128xf32> -> vector<8x128xf32>
    %61 = arith.mulf %56, %60 : vector<8x128xf32>
    %62 = arith.truncf %61 : vector<8x128xf32> to vector<8x128xbf16>
    %c4 = arith.constant 4 : index
    %c0_24 = arith.constant 0 : index
    %c0_25 = arith.constant 0 : index
    %63 = vector.load %arg4[%c4, %c0_24, %c0_25] : memref<9x128x128xbf16, #tpu.memory_space<vmem>>, vector<1x128x128xbf16>
    %64 = vector.shape_cast %63 : vector<1x128x128xbf16> to vector<128x128xbf16>
    %cst_26 = arith.constant dense<0.000000e+00> : vector<8x128xf32>
    %65 = tpu.matmul %62, %64, %cst_26 {dimension_numbers = #tpu.dot_dimension_numbers<[1], [0], [0], [1], [0, 0, 1, 1], [], []>} : vector<8x128xbf16>, vector<128x128xbf16>, vector<8x128xf32> -> vector<8x128xf32>
    %66 = vector.extract_strided_slice %4 {offsets = [10, 0], sizes = [1, 128], strides = [1, 1]} : vector<16x128xf32> to vector<1x128xf32>
    %67 = vector.broadcast %66 : vector<1x128xf32> to vector<8x128xf32>
    %68 = arith.addf %65, %67 : vector<8x128xf32>
    %69 = arith.addf %68, %39 : vector<8x128xf32>
    %cst_27 = arith.constant 0.000000e+00 : f32
    %70 = vector.broadcast %cst_27 : f32 to vector<8x128xf32>
    %71 = arith.cmpf ogt, %69, %70 : vector<8x128xf32>
    %cst_28 = arith.constant 2.000000e-01 : f32
    %72 = vector.broadcast %cst_28 : f32 to vector<8x128xf32>
    %73 = arith.mulf %72, %69 : vector<8x128xf32>
    %74 = arith.select %71, %69, %73 : vector<8x128xi1>, vector<8x128xf32>
    %75 = arith.truncf %74 : vector<8x128xf32> to vector<8x128xbf16>
    %c1 = arith.constant 1 : index
    %c0_29 = arith.constant 0 : index
    %c0_30 = arith.constant 0 : index
    %76 = vector.load %arg4[%c1, %c0_29, %c0_30] : memref<9x128x128xbf16, #tpu.memory_space<vmem>>, vector<1x128x128xbf16>
    %77 = vector.shape_cast %76 : vector<1x128x128xbf16> to vector<128x128xbf16>
    %cst_31 = arith.constant dense<0.000000e+00> : vector<8x128xf32>
    %78 = tpu.matmul %75, %77, %cst_31 {dimension_numbers = #tpu.dot_dimension_numbers<[1], [0], [0], [1], [0, 0, 1, 1], [], []>} : vector<8x128xbf16>, vector<128x128xbf16>, vector<8x128xf32> -> vector<8x128xf32>
    %79 = vector.extract_strided_slice %4 {offsets = [3, 0], sizes = [1, 128], strides = [1, 1]} : vector<16x128xf32> to vector<1x128xf32>
    %80 = vector.broadcast %79 : vector<1x128xf32> to vector<8x128xf32>
    %81 = arith.addf %78, %80 : vector<8x128xf32>
    %cst_32 = arith.constant dense<0.000000e+00> : vector<8xf32>
    %82 = vector.multi_reduction <add>, %81, %cst_32 [1] : vector<8x128xf32> to vector<8xf32>
    %83 = vector.shape_cast %82 : vector<8xf32> to vector<8x1xf32>
    %cst_33 = arith.constant 3.125000e-02 : f32
    %84 = vector.broadcast %cst_33 : f32 to vector<8x1xf32>
    %85 = arith.mulf %83, %84 : vector<8x1xf32>
    %86 = arith.mulf %81, %81 : vector<8x128xf32>
    %cst_34 = arith.constant dense<0.000000e+00> : vector<8xf32>
    %87 = vector.multi_reduction <add>, %86, %cst_34 [1] : vector<8x128xf32> to vector<8xf32>
    %88 = vector.shape_cast %87 : vector<8xf32> to vector<8x1xf32>
    %cst_35 = arith.constant 3.125000e-02 : f32
    %89 = vector.broadcast %cst_35 : f32 to vector<8x1xf32>
    %90 = arith.mulf %88, %89 : vector<8x1xf32>
    %91 = arith.mulf %85, %85 : vector<8x1xf32>
    %92 = arith.subf %90, %91 : vector<8x1xf32>
    %93 = vector.broadcast %85 : vector<8x1xf32> to vector<8x128xf32>
    %94 = arith.subf %81, %93 : vector<8x128xf32>
    %cst_36 = arith.constant 9.99999974E-6 : f32
    %95 = vector.broadcast %cst_36 : f32 to vector<8x1xf32>
    %96 = arith.addf %92, %95 : vector<8x1xf32>
    %97 = math.rsqrt %96 : vector<8x1xf32>
    %98 = vector.broadcast %97 : vector<8x1xf32> to vector<8x128xf32>
    %99 = arith.mulf %94, %98 : vector<8x128xf32>
    %100 = vector.extract_strided_slice %4 {offsets = [4, 0], sizes = [1, 128], strides = [1, 1]} : vector<16x128xf32> to vector<1x128xf32>
    %101 = vector.broadcast %100 : vector<1x128xf32> to vector<8x128xf32>
    %102 = arith.mulf %99, %101 : vector<8x128xf32>
    %103 = vector.extract_strided_slice %4 {offsets = [5, 0], sizes = [1, 128], strides = [1, 1]} : vector<16x128xf32> to vector<1x128xf32>
    %104 = vector.broadcast %103 : vector<1x128xf32> to vector<8x128xf32>
    %105 = arith.addf %102, %104 : vector<8x128xf32>
    %cst_37 = arith.constant 0.000000e+00 : f32
    %106 = vector.broadcast %cst_37 : f32 to vector<8x128xf32>
    %107 = arith.cmpf ogt, %105, %106 : vector<8x128xf32>
    %cst_38 = arith.constant 0.00999999977 : f32
    %108 = vector.broadcast %cst_38 : f32 to vector<8x128xf32>
    %109 = arith.mulf %108, %105 : vector<8x128xf32>
    %110 = arith.select %107, %105, %109 : vector<8x128xi1>, vector<8x128xf32>
    %111 = arith.truncf %110 : vector<8x128xf32> to vector<8x128xbf16>
    %c5 = arith.constant 5 : index
    %c0_39 = arith.constant 0 : index
    %c0_40 = arith.constant 0 : index
    %112 = vector.load %arg4[%c5, %c0_39, %c0_40] : memref<9x128x128xbf16, #tpu.memory_space<vmem>>, vector<1x128x128xbf16>
    %113 = vector.shape_cast %112 : vector<1x128x128xbf16> to vector<128x128xbf16>
    %cst_41 = arith.constant dense<0.000000e+00> : vector<8x128xf32>
    %114 = tpu.matmul %111, %113, %cst_41 {dimension_numbers = #tpu.dot_dimension_numbers<[1], [0], [0], [1], [0, 0, 1, 1], [], []>} : vector<8x128xbf16>, vector<128x128xbf16>, vector<8x128xf32> -> vector<8x128xf32>
    %115 = vector.extract_strided_slice %4 {offsets = [11, 0], sizes = [1, 128], strides = [1, 1]} : vector<16x128xf32> to vector<1x128xf32>
    %116 = vector.broadcast %115 : vector<1x128xf32> to vector<8x128xf32>
    %117 = arith.addf %114, %116 : vector<8x128xf32>
    %118 = vector.extract_strided_slice %3 {offsets = [1, 0], sizes = [1, 128], strides = [1, 1]} : vector<3x128xf32> to vector<1x128xf32>
    %119 = vector.broadcast %118 : vector<1x128xf32> to vector<8x128xf32>
    %120 = arith.addf %117, %119 : vector<8x128xf32>
    %cst_42 = arith.constant -3.000000e+01 : f32
    %121 = vector.broadcast %cst_42 : f32 to vector<8x128xf32>
    %122 = arith.maximumf %120, %121 : vector<8x128xf32>
    %cst_43 = arith.constant 0.000000e+00 : f32
    %123 = vector.broadcast %cst_43 : f32 to vector<8x128xf32>
    %124 = arith.subf %123, %122 : vector<8x128xf32>
    %125 = math.exp %124 : vector<8x128xf32>
    %cst_44 = arith.constant 1.000000e+00 : f32
    %126 = vector.broadcast %cst_44 : f32 to vector<8x128xf32>
    %127 = arith.subf %126, %125 : vector<8x128xf32>
    %128 = arith.mulf %125, %125 : vector<8x128xf32>
    %cst_45 = arith.constant 1.000000e+00 : f32
    %129 = vector.broadcast %cst_45 : f32 to vector<8x128xf32>
    %130 = arith.addf %129, %128 : vector<8x128xf32>
    %131 = tpu.reciprocal %130 {approx = true} : vector<8x128xf32> -> vector<8x128xf32>
    %132 = arith.mulf %127, %131 : vector<8x128xf32>
    %133 = arith.truncf %132 : vector<8x128xf32> to vector<8x128xbf16>
    %c6 = arith.constant 6 : index
    %c0_46 = arith.constant 0 : index
    %c0_47 = arith.constant 0 : index
    %134 = vector.load %arg4[%c6, %c0_46, %c0_47] : memref<9x128x128xbf16, #tpu.memory_space<vmem>>, vector<1x128x128xbf16>
    %135 = vector.shape_cast %134 : vector<1x128x128xbf16> to vector<128x128xbf16>
    %cst_48 = arith.constant dense<0.000000e+00> : vector<8x128xf32>
    %136 = tpu.matmul %133, %135, %cst_48 {dimension_numbers = #tpu.dot_dimension_numbers<[1], [0], [0], [1], [0, 0, 1, 1], [], []>} : vector<8x128xbf16>, vector<128x128xbf16>, vector<8x128xf32> -> vector<8x128xf32>
    %137 = vector.extract_strided_slice %4 {offsets = [12, 0], sizes = [1, 128], strides = [1, 1]} : vector<16x128xf32> to vector<1x128xf32>
    %138 = vector.broadcast %137 : vector<1x128xf32> to vector<8x128xf32>
    %139 = arith.addf %136, %138 : vector<8x128xf32>
    %140 = arith.addf %139, %110 : vector<8x128xf32>
    %cst_49 = arith.constant 0.000000e+00 : f32
    %141 = vector.broadcast %cst_49 : f32 to vector<8x128xf32>
    %142 = arith.cmpf ogt, %140, %141 : vector<8x128xf32>
    %cst_50 = arith.constant 2.000000e-01 : f32
    %143 = vector.broadcast %cst_50 : f32 to vector<8x128xf32>
    %144 = arith.mulf %143, %140 : vector<8x128xf32>
    %145 = arith.select %142, %140, %144 : vector<8x128xi1>, vector<8x128xf32>
    %146 = arith.truncf %145 : vector<8x128xf32> to vector<8x128xbf16>
    %c2 = arith.constant 2 : index
    %c0_51 = arith.constant 0 : index
    %c0_52 = arith.constant 0 : index
    %147 = vector.load %arg4[%c2, %c0_51, %c0_52] : memref<9x128x128xbf16, #tpu.memory_space<vmem>>, vector<1x128x128xbf16>
    %148 = vector.shape_cast %147 : vector<1x128x128xbf16> to vector<128x128xbf16>
    %cst_53 = arith.constant dense<0.000000e+00> : vector<8x128xf32>
    %149 = tpu.matmul %146, %148, %cst_53 {dimension_numbers = #tpu.dot_dimension_numbers<[1], [0], [0], [1], [0, 0, 1, 1], [], []>} : vector<8x128xbf16>, vector<128x128xbf16>, vector<8x128xf32> -> vector<8x128xf32>
    %150 = vector.extract_strided_slice %4 {offsets = [6, 0], sizes = [1, 128], strides = [1, 1]} : vector<16x128xf32> to vector<1x128xf32>
    %151 = vector.broadcast %150 : vector<1x128xf32> to vector<8x128xf32>
    %152 = arith.addf %149, %151 : vector<8x128xf32>
    %cst_54 = arith.constant dense<0.000000e+00> : vector<8xf32>
    %153 = vector.multi_reduction <add>, %152, %cst_54 [1] : vector<8x128xf32> to vector<8xf32>
    %154 = vector.shape_cast %153 : vector<8xf32> to vector<8x1xf32>
    %cst_55 = arith.constant 3.125000e-02 : f32
    %155 = vector.broadcast %cst_55 : f32 to vector<8x1xf32>
    %156 = arith.mulf %154, %155 : vector<8x1xf32>
    %157 = arith.mulf %152, %152 : vector<8x128xf32>
    %cst_56 = arith.constant dense<0.000000e+00> : vector<8xf32>
    %158 = vector.multi_reduction <add>, %157, %cst_56 [1] : vector<8x128xf32> to vector<8xf32>
    %159 = vector.shape_cast %158 : vector<8xf32> to vector<8x1xf32>
    %cst_57 = arith.constant 3.125000e-02 : f32
    %160 = vector.broadcast %cst_57 : f32 to vector<8x1xf32>
    %161 = arith.mulf %159, %160 : vector<8x1xf32>
    %162 = arith.mulf %156, %156 : vector<8x1xf32>
    %163 = arith.subf %161, %162 : vector<8x1xf32>
    %164 = vector.broadcast %156 : vector<8x1xf32> to vector<8x128xf32>
    %165 = arith.subf %152, %164 : vector<8x128xf32>
    %cst_58 = arith.constant 9.99999974E-6 : f32
    %166 = vector.broadcast %cst_58 : f32 to vector<8x1xf32>
    %167 = arith.addf %163, %166 : vector<8x1xf32>
    %168 = math.rsqrt %167 : vector<8x1xf32>
    %169 = vector.broadcast %168 : vector<8x1xf32> to vector<8x128xf32>
    %170 = arith.mulf %165, %169 : vector<8x128xf32>
    %171 = vector.extract_strided_slice %4 {offsets = [7, 0], sizes = [1, 128], strides = [1, 1]} : vector<16x128xf32> to vector<1x128xf32>
    %172 = vector.broadcast %171 : vector<1x128xf32> to vector<8x128xf32>
    %173 = arith.mulf %170, %172 : vector<8x128xf32>
    %174 = vector.extract_strided_slice %4 {offsets = [8, 0], sizes = [1, 128], strides = [1, 1]} : vector<16x128xf32> to vector<1x128xf32>
    %175 = vector.broadcast %174 : vector<1x128xf32> to vector<8x128xf32>
    %176 = arith.addf %173, %175 : vector<8x128xf32>
    %cst_59 = arith.constant 0.000000e+00 : f32
    %177 = vector.broadcast %cst_59 : f32 to vector<8x128xf32>
    %178 = arith.cmpf ogt, %176, %177 : vector<8x128xf32>
    %cst_60 = arith.constant 0.00999999977 : f32
    %179 = vector.broadcast %cst_60 : f32 to vector<8x128xf32>
    %180 = arith.mulf %179, %176 : vector<8x128xf32>
    %181 = arith.select %178, %176, %180 : vector<8x128xi1>, vector<8x128xf32>
    %182 = arith.truncf %181 : vector<8x128xf32> to vector<8x128xbf16>
    %c7 = arith.constant 7 : index
    %c0_61 = arith.constant 0 : index
    %c0_62 = arith.constant 0 : index
    %183 = vector.load %arg4[%c7, %c0_61, %c0_62] : memref<9x128x128xbf16, #tpu.memory_space<vmem>>, vector<1x128x128xbf16>
    %184 = vector.shape_cast %183 : vector<1x128x128xbf16> to vector<128x128xbf16>
    %cst_63 = arith.constant dense<0.000000e+00> : vector<8x128xf32>
    %185 = tpu.matmul %182, %184, %cst_63 {dimension_numbers = #tpu.dot_dimension_numbers<[1], [0], [0], [1], [0, 0, 1, 1], [], []>} : vector<8x128xbf16>, vector<128x128xbf16>, vector<8x128xf32> -> vector<8x128xf32>
    %186 = vector.extract_strided_slice %4 {offsets = [13, 0], sizes = [1, 128], strides = [1, 1]} : vector<16x128xf32> to vector<1x128xf32>
    %187 = vector.broadcast %186 : vector<1x128xf32> to vector<8x128xf32>
    %188 = arith.addf %185, %187 : vector<8x128xf32>
    %189 = vector.extract_strided_slice %3 {offsets = [2, 0], sizes = [1, 128], strides = [1, 1]} : vector<3x128xf32> to vector<1x128xf32>
    %190 = vector.broadcast %189 : vector<1x128xf32> to vector<8x128xf32>
    %191 = arith.addf %188, %190 : vector<8x128xf32>
    %cst_64 = arith.constant -3.000000e+01 : f32
    %192 = vector.broadcast %cst_64 : f32 to vector<8x128xf32>
    %193 = arith.maximumf %191, %192 : vector<8x128xf32>
    %cst_65 = arith.constant 0.000000e+00 : f32
    %194 = vector.broadcast %cst_65 : f32 to vector<8x128xf32>
    %195 = arith.subf %194, %193 : vector<8x128xf32>
    %196 = math.exp %195 : vector<8x128xf32>
    %cst_66 = arith.constant 1.000000e+00 : f32
    %197 = vector.broadcast %cst_66 : f32 to vector<8x128xf32>
    %198 = arith.subf %197, %196 : vector<8x128xf32>
    %199 = arith.mulf %196, %196 : vector<8x128xf32>
    %cst_67 = arith.constant 1.000000e+00 : f32
    %200 = vector.broadcast %cst_67 : f32 to vector<8x128xf32>
    %201 = arith.addf %200, %199 : vector<8x128xf32>
    %202 = tpu.reciprocal %201 {approx = true} : vector<8x128xf32> -> vector<8x128xf32>
    %203 = arith.mulf %198, %202 : vector<8x128xf32>
    %204 = arith.truncf %203 : vector<8x128xf32> to vector<8x128xbf16>
    %c8 = arith.constant 8 : index
    %c0_68 = arith.constant 0 : index
    %c0_69 = arith.constant 0 : index
    %205 = vector.load %arg4[%c8, %c0_68, %c0_69] : memref<9x128x128xbf16, #tpu.memory_space<vmem>>, vector<1x128x128xbf16>
    %206 = vector.shape_cast %205 : vector<1x128x128xbf16> to vector<128x128xbf16>
    %cst_70 = arith.constant dense<0.000000e+00> : vector<8x128xf32>
    %207 = tpu.matmul %204, %206, %cst_70 {dimension_numbers = #tpu.dot_dimension_numbers<[1], [0], [0], [1], [0, 0, 1, 1], [], []>} : vector<8x128xbf16>, vector<128x128xbf16>, vector<8x128xf32> -> vector<8x128xf32>
    %208 = vector.extract_strided_slice %4 {offsets = [14, 0], sizes = [1, 128], strides = [1, 1]} : vector<16x128xf32> to vector<1x128xf32>
    %209 = vector.broadcast %208 : vector<1x128xf32> to vector<8x128xf32>
    %210 = arith.addf %207, %209 : vector<8x128xf32>
    %211 = arith.addf %210, %181 : vector<8x128xf32>
    %cst_71 = arith.constant 0.000000e+00 : f32
    %212 = vector.broadcast %cst_71 : f32 to vector<8x128xf32>
    %213 = arith.cmpf ogt, %211, %212 : vector<8x128xf32>
    %cst_72 = arith.constant 2.000000e-01 : f32
    %214 = vector.broadcast %cst_72 : f32 to vector<8x128xf32>
    %215 = arith.mulf %214, %211 : vector<8x128xf32>
    %216 = arith.select %213, %211, %215 : vector<8x128xi1>, vector<8x128xf32>
    %217 = vector.extract_strided_slice %216 {offsets = [0, 0], sizes = [8, 32], strides = [1, 1]} : vector<8x128xf32> to vector<8x32xf32>
    %c0_73 = arith.constant 0 : index
    %c0_74 = arith.constant 0 : index
    %c0_75 = arith.constant 0 : index
    %218 = vector.load %arg6[%c0_73, %c0_74, %c0_75] : memref<1x8x32xf32, #tpu.memory_space<vmem>>, vector<1x8x32xf32>
    %219 = vector.shape_cast %218 : vector<1x8x32xf32> to vector<8x32xf32>
    %220 = vector.shape_cast %217 : vector<8x32xf32> to vector<1x8x32xf32>
    tpu.vector_store %arg6[%c0_73, %c0_74, %c0_75], %220 {strides = array<i32>} : memref<1x8x32xf32, #tpu.memory_space<vmem>>, vector<1x8x32xf32>,
    return
  }
  func.func @transform_0(%arg0: i32, %arg1: i32) -> (i32, i32, i32) {
    %c0_i32 = arith.constant 0 : i32
    %c0_i32_0 = arith.constant 0 : i32
    return %arg0, %arg1, %c0_i32 : i32, i32, i32
  }
  func.func @transform_1(%arg0: i32, %arg1: i32) -> (i32, i32, i32) {
    %c0_i32 = arith.constant 0 : i32
    %c0_i32_0 = arith.constant 0 : i32
    %c0_i32_1 = arith.constant 0 : i32
    return %arg0, %c0_i32, %c0_i32_0 : i32, i32, i32
  }
  func.func @transform_2(%arg0: i32, %arg1: i32) -> (i32, i32, i32) {
    %c0_i32 = arith.constant 0 : i32
    %c0_i32_0 = arith.constant 0 : i32
    %c0_i32_1 = arith.constant 0 : i32
    %c0_i32_2 = arith.constant 0 : i32
    return %c0_i32, %c0_i32_0, %c0_i32_1 : i32, i32, i32
  }
  func.func @transform_3(%arg0: i32, %arg1: i32) -> (i32, i32) {
    %c0_i32 = arith.constant 0 : i32
    %c0_i32_0 = arith.constant 0 : i32
    %c0_i32_1 = arith.constant 0 : i32
    return %c0_i32, %c0_i32_0 : i32, i32
  }
  func.func @transform_4(%arg0: i32, %arg1: i32) -> (i32, i32, i32) {
    %c0_i32 = arith.constant 0 : i32
    %c0_i32_0 = arith.constant 0 : i32
    return %arg0, %arg1, %c0_i32 : i32, i32, i32
  }
}

</mosaic_0001>

<bundles_post_ra>
// kernel: tpu_custom_call.1
= control target key start
LH: loop header
LB: loop body
LE: loop exit
PB: predicated region body
PF: predicated region fallthrough
CT: control target
= control target key end

     0   :  { %9 = vsyncpa [#allocation3], 0  ;;  %s2070_s0 = inlined_call_operand.hbm [shape: bf16[2,8,128], index: 0, kind: input, shape index: {}]   ;;  %s2071_s1 = inlined_call_operand.vmem [shape: f32[2,3,128], index: 1, kind: input, shape index: {}]   ;;  %s2072_s2 = inlined_call_operand.hbm [shape: bf16[9,128,128], index: 2, kind: input, shape index: {}]   ;;  %s2073_s3 = inlined_call_operand.vmem [shape: f32[16,128], index: 3, kind: input, shape index: {}]   ;;  %s2074_s4 = inlined_call_operand.hbm [shape: f32[2,8,32], index: 4, kind: output, shape index: {}]  }
   0x1   :  { %11 = vsyncpa [#allocation3 + $0x1], 0 }
   0x2   :  { %12 = vsyncpa [#allocation6], 0 }
   0x3   :  { %13 = vsyncpa [#allocation4], 0 }
   0x4   :  { %15 = vsyncpa [#allocation4 + $0x1], 0  ;;  %s1886_s15 = smov 0   ;;  %s1888_s16 = smov 0  }
   0x5   :  { %s1890_s17 = smov 0   ;;  %s1892_s18 = smov 0  }
   0x6   :  { %s1894_s19 = smov 0   ;;  %s1896_s20 = smov 0  }
   0x7 LB: > { %s1241_s21 = sadd.s32 4294967295, %s1856_s20   ;;  %p1243_p0 = scmp.ge.s32.totalorder %s1856_s20, 1  ;;  %s1856_s20 = sphi %s1896_s20, %s21_s20   ;;  %s1852_s19 = sphi %s1894_s19, %s2085_s19   ;;  %s1848_s18 = sphi %s1892_s18, %s2084_s18   ;;  %s1844_s17 = sphi %s1890_s17, %s2083_s17   ;;  %s1840_s16 = sphi %s1888_s16, %s2082_s16   ;;  %s1836_s15 = sphi %s1886_s15, %s2081_s15  }
   0x8   : > { %p1918_p1 = scmp.eq.s32.totalorder %s1241_s21, 0  ;;  %p162_p2 = scmp.lt.s32.totalorder %s1856_s20, 3 }
   0x9   : > { %s173_s25 = sshll.u32 %s2072_s2, 4  ;;  %s1858_s27 = smov [#allocation5]   ;;  %s174_s25 = int_to_ptr.hbm [resolvable:$true] %s173_s25 }
   0xa   : > { %p1926_p3 = pnand %p1243_p0, %p162_p2  ;;  %s175_s28 = sshll.u32 %s1858_s27, 4  ;;  %s176_s28 = int_to_ptr.vmem [resolvable:$true] %s175_s28 }
   0xb   : > { %p1245_p6 = scmp.ge.s32.totalorder %s1856_s20, 2  ;;  %s1859_s29 = smov 64  }
   0xc   : > { %p1625_p4 = pneg %p1926_p3  ;;  %s1860_s30 = smov 4  }
   0xd   : > { %s1242_s5 = sadd.s32 4294967294, %s1856_s20   ;;  %s33_s6 = sadd.s32 1, %s1852_s19 }
   0xe   : > { %p1626_p5 = pnand %p1625_p4, %p1918_p1  ;;  %s42_s7 = sadd.s32 1, %s1844_s17 }
   0xf   : > { %p35_p7 = scmp.ge.s32.totalorder %s33_s6, 2  ;;  %p49_p8 = scmp.ne.s32.totalorder %s1844_s17, %s1840_s16 }
  0x10   : > { %1628 = dma.hbm_to_vmem [thread:$0]  (!%p1626_p5), %s174_s25, 9216, %s176_s28, [#allocation6], %s1859_s29, %s1859_s29, %s1860_s30  }
  0x11   : > { %p50_p9 = scmp.eq.s32.totalorder %s1856_s20, 0  ;;  %p55_p10 = scmp.ne.s32.totalorder %s1840_s16, %s1836_s15 }
  0x12   : > { %s2087_s6 = smov (%p35_p7, %s33_s6), 0  ;;  %p149_p13 = scmp.eq.s32.totalorder %s1241_s21, 1 }
  0x13   : > { %p1945_p11 = por %p50_p9, %p49_p8  ;;  %p1951_p12 = por %p1918_p1, %p55_p10 }
  0x14   : > { %s37_s10 = ssub.s32 %s1852_s19, %s2087_s6  ;;  %p155_p2 = scmp.eq.s32.totalorder %s1242_s5, 1 }
  0x15   : > { %p40_p0 = scmp.eq.s32.totalorder %s37_s10, 0  ;;  %p1957_p4 = por %p149_p13, %p49_p8 }
  0x16   : > { %p1638_p5 = scmp.lt.s32.totalorder %s1856_s20, 2  ;;  %p1965_p7 = por %p155_p2, %p55_p10 }
  0x17   : > { %s1963_s12 = scalar_select %p40_p0, %s1844_s17, %s42_s7  }
  0x18   : > { %s192_s14 = sand.u32 1, %s1844_s17   ;;  %s1247_s24 = sshll.u32 %s1852_s19, 2 }
  0x19   : > { %s1246_s23 = sshll.u32 %s192_s14, 2  ;;  %s201_s21 = scalar_lea.hbm %s2070_s0, %s1247_s24 }
  0x1a   : > { %s196_s28 = scalar_lea.vmem [#allocation2], %s1246_s23  ;;  %s203_s30 = sshll.u32 %s201_s21, 4  ;;  %s204_s30 = int_to_ptr.hbm [resolvable:$true] %s203_s30 }
  0x1b   : > { %s205_s29 = sshll.u32 %s196_s28, 4  ;;  %p1630_p8 = pnand %p1638_p5, %p1945_p11  ;;  %s206_s29 = int_to_ptr.vmem [resolvable:$true] %s205_s29 }
  0x1c   : > { %s193_s5 = scalar_lea.sflag [#allocation3], %s192_s14  ;;  %221 = sbr.rel (%p1926_p3) target bundleno = 1833 (0x729), region = 36 }
  0x1d   : > { %1632 = dma.hbm_to_vmem [thread:$0]  (!%p1630_p8), %s204_s30, 64, %s206_s29, %s193_s5  }
  0x1e   : > { %s1979_s7 = sand.u32 (!%p1926_p3), 1, %s1840_s16  }
  0x1f   : > { %s1249_s10 = sshll.u32 (!%p1926_p3), %s1979_s7, 2  ;;  %s224_s24 = scalar_lea.sflag (!%p1926_p3), [#allocation3], %s1979_s7 }
  0x20   : > { %s227_s23 = scalar_lea.vmem (!%p1926_p3), [#allocation2], %s1249_s10 }
  0x21   : > { %1823 = dma.done.wait (%p1951_p12), %s224_s24, 64  }
  0x22   : > { %1825 = vsyncadd (%p1951_p12), %s224_s24, 4294967232 }
  0x23   : > { %1827 = dma.done.wait (%p1918_p1), [#allocation6], 9216  }
  0x24   : > { %1829 = vsyncadd (%p1918_p1), [#allocation6], 4294958080  ;;  %v1552_v0 = vld [vmem:[#allocation5 + $0x38] sm:$0xff]  ;;  %v1551_v1 = vld [vmem:[#allocation5 + $0x30] sm:$0xff]  ;;  %p262_p1 = scmp.lt.s32.totalorder %s1848_s18, 1  ;;  %s1251_s29 = sshll.u32 %s1979_s7, 3 }
  0x25   : > { %335 = vmatpush.bf16.msra.mxu0 %v1552_v0  ;;  %v1550_v2 = vld [vmem:[#allocation5 + $0x28] sm:$0xff]  ;;  %v1549_v3 = vld [vmem:[#allocation5 + $0x20] sm:$0xff]  ;;  %v1548_v4 = vld [vmem:[#allocation5 + $0x18] sm:$0xff]  ;;  %s1542_s30 = sshll.u32 %s1848_s18, 3  ;;  %vm1120_vm15 = vcmask 261120  }
  0x26   : > { %v1547_v5 = vld [vmem:[#allocation5 + $0x10] sm:$0xff]  ;;  %v1546_v6 = vld [vmem:[#allocation5 + $0x8] sm:$0xff]  ;;  %v1545_v7 = vld [vmem:[#allocation5] sm:$0xff]  ;;  %s263_s8 = scalar_select %p262_p1, %s1848_s18, 1 }
  0x27   : > { %v266_v8 = vld [vmem:[%s227_s23] sm:$0xf]  ;;  %v1559_v16 = vld [vmem:[#allocation5 + $0xf0] sm:$0xff]  ;;  %v1558_v17 = vld [vmem:[#allocation5 + $0xe8] sm:$0xff]  ;;  %s1134_s24 = scalar_lea.hbm %s2074_s4, %s1542_s30  ;;  %s261_s23 = scalar_lea.vmem [#allocation7], %s1251_s29 }
  0x28   : > { %v1994_v9 = vld [vmem:[%s2073_s3] sm:$0xff]  ;;  %v1557_v18 = vld [vmem:[#allocation5 + $0xe0] sm:$0xff]  ;;  %v1555_v20 = vld [vmem:[#allocation5 + $0xd0] sm:$0xff]  ;;  %s1252_s9 = sshll.u32 %s263_s8, 2  ;;  %s1136_s22 = sshll.u32 %s261_s23, 4  ;;  %s1137_s22 = int_to_ptr.vmem [resolvable:$true] %s1136_s22 }
  0x29   : > { %336 = vmatpush.bf16.msra.mxu0 %v1551_v1  ;;  %v286_v10 = vperm.slane %v1994_v9, 0  ;;  %v1560_v15 = vld [vmem:[#allocation5 + $0xf8] sm:$0xff]  ;;  %v1554_v22 = vld [vmem:[#allocation5 + $0xc8] sm:$0xff]  ;;  %v1553_v24 = vld [vmem:[#allocation5 + $0xc0] sm:$0xff]  ;;  %v370_v37 = vperm.slane %v1994_v9, 1  ;;  %v372_v40 = vperm.slane %v1994_v9, 2  ;;  %s265_s27 = scalar_lea.vmem %s2071_s1, %s1252_s9 }
  0x2a   : > { %444 = vmatpush.bf16.msra.mxu1 %v1560_v15  ;;  %v1556_v19 = vld [vmem:[#allocation5 + $0xd8] sm:$0xff]  ;;  %v1567_v47 = vld [vmem:[#allocation5 + $0x130] sm:$0xff]  ;;  %v1566_v48 = vld [vmem:[#allocation5 + $0x128] sm:$0xff]  ;;  %s1138_s26 = sshll.u32 %s1134_s24, 4  ;;  %s1123_s18 = scalar_lea.sflag [#allocation4], %s1979_s7  ;;  %s1139_s26 = int_to_ptr.hbm [resolvable:$true] %s1138_s26 }
  0x2b   : > { %v1568_v46 = vld [vmem:[#allocation5 + $0x138] sm:$0xff]  ;;  %v1565_v49 = vld [vmem:[#allocation5 + $0x120] sm:$0xff]  ;;  %v1563_v51 = vld [vmem:[#allocation5 + $0x110] sm:$0xff]  ;;  %s1784_s8 = sshra.s32 %s1139_s26, 4  ;;  %s1785_s8 = int_to_ptr.hbm [resolvable:$true] %s1784_s8 }
  0x2c   : > { %535 = vmatpush.bf16.msra.mxu2 %v1568_v46  ;;  %v1564_v50 = vld [vmem:[#allocation5 + $0x118] sm:$0xff]  ;;  %v1562_v52 = vld [vmem:[#allocation5 + $0x108] sm:$0xff]  ;;  %v2011_v53 = vld [vmem:[%s2073_s3 + $0x8] sm:$0xff]  ;;  %s1786_s9 = scalar_lea.hbm %s1785_s8, 8  ;;  %p1791_p11 = scmp.lt.s32.totalorder %s1785_s8, %s2074_s4 }
  0x2d   : > { %337 = vmatpush.bf16.msra.mxu0 %v1550_v2  ;;  %v1561_v54 = vld [vmem:[#allocation5 + $0x100] sm:$0xff]  ;;  %v2013_v55 = vld [vmem:[%s265_s27] sm:$0x7]  ;;  %v395_v56 = vperm.slane %v2011_v53, 1  ;;  %v1575_v62 = vld [vmem:[#allocation5 + $0x70] sm:$0xff]  ;;  %p1787_p3 = scmp.ne.s32.totalorder %s1785_s8, %s1786_s9  ;;  %s1790_s27 = scalar_lea.hbm %s2074_s4, 16 }
  0x2e   : > { %445 = vmatpush.bf16.msra.mxu1 %v1559_v16  ;;  %v457_v57 = vperm.slane %v2013_v55, 0  ;;  %v1576_v60 = vld [vmem:[#allocation5 + $0x78] sm:$0xff]  ;;  %v1574_v1 = vld [vmem:[#allocation5 + $0x68] sm:$0xff]  ;;  %v1569_v16 = vld [vmem:[#allocation5 + $0x40] sm:$0xff]  ;;  %p1792_p12 = scmp.lt.s32.totalorder %s1790_s27, %s1786_s9 }
  0x2f   : > { %619 = vmatpush.bf16.msra.mxu3 %v1576_v60  ;;  %v1570_v15 = vld [vmem:[#allocation5 + $0x48] sm:$0xff]  ;;  %p1788_p9 = pnand %p1787_p3, %p1957_p4 }
  0x30   : > { %536 = vmatpush.bf16.msra.mxu2 %v1567_v47  ;;  %p1793_p13 = por %p1792_p12, %p1791_p11 }
  0x31   : > { %338 = vmatpush.bf16.msra.mxu0 %v1549_v3  ;;  %p1789_p10 = pneg %p1788_p9 }
  0x32   : > { %446 = vmatpush.bf16.msra.mxu1 %v1558_v17  ;;  %v486_v17 = vperm.slane %v2011_v53, 2 }
  0x33   : > { %620 = vmatpush.bf16.msra.mxu3 %v1575_v62  ;;  %p1794_p0 = pnand %p1793_p13, %p1789_p10 }
  0x34   : > { %537 = vmatpush.bf16.msra.mxu2 %v1566_v48 }
  0x35   : > { %339 = vmatpush.bf16.msra.mxu0 %v1548_v4  ;;  %v1573_v4 = vld [vmem:[#allocation5 + $0x60] sm:$0xff] }
  0x36   : > { %447 = vmatpush.bf16.msra.mxu1 %v1557_v18 }
  0x37   : > { %621 = vmatpush.bf16.msra.mxu3 %v1574_v1  ;;  %v1590_v1 = vld [vmem:[#allocation5 + $0x1a8] sm:$0xff] }
  0x38   : > { %538 = vmatpush.bf16.msra.mxu2 %v1565_v49 }
  0x39   : > { %340 = vmatpush.bf16.msra.mxu0 %v1547_v5  ;;  %v1572_v5 = vld [vmem:[#allocation5 + $0x58] sm:$0xff] }
  0x3a   : > { %448 = vmatpush.bf16.msra.mxu1 %v1556_v19 }
  0x3b   : > { %622 = vmatpush.bf16.msra.mxu3 %v1573_v4  ;;  %v1587_v4 = vld [vmem:[#allocation5 + $0x190] sm:$0xff] }
  0x3c   : > { %539 = vmatpush.bf16.msra.mxu2 %v1564_v50 }
  0x3d   : > { %341 = vmatpush.bf16.msra.mxu0 %v1546_v6 }
  0x3e   : > { %449 = vmatpush.bf16.msra.mxu1 %v1555_v20 }
  0x3f   : > { %623 = vmatpush.bf16.msra.mxu3 %v1572_v5  ;;  %v1586_v5 = vld [vmem:[#allocation5 + $0x188] sm:$0xff] }
  0x40   : > { %540 = vmatpush.bf16.msra.mxu2 %v1563_v51 }
  0x41   : > { %342 = vmatpush.bf16.msra.mxu0 %v1545_v7 }
  0x42   : > { %450 = vmatpush.bf16.msra.mxu1 %v1554_v22 }
  0x44   : > { %343 = vmatmul.bf16.vlgmr.msra.gmra.mxu0 %v266_v8  ;;  %541 = vmatpush.bf16.msra.mxu2 %v1562_v52  ;;  %v1571_v8 = vld [vmem:[#allocation5 + $0x50] sm:$0xff]  ;;  %v654_v52 = vperm.slane %v1994_v9, 4 }
  0x45   : > { %624 = vmatpush.bf16.msra.mxu3 %v1571_v8  ;;  %v741_v8 = vperm.slane %v2013_v55, 1 }
  0x46   : > { %451 = vmatpush.bf16.msra.mxu1 %v1553_v24 }
  0x48   : > { %542 = vmatpush.bf16.msra.mxu2 %v1561_v54 }
  0x49   : > { %625 = vmatpush.bf16.msra.mxu3 %v1570_v15 }
  0x4d   : > { %626 = vmatpush.bf16.msra.mxu3 %v1569_v16 }
  0xc1   : > { %v344_v11 = vpop.f32.mrf.mxu0 }
  0xc2   : > { %v345_v12 = vadd.f32 %v344_v11, %v286_v10 }
  0xc4   : > { %348 = vadd.xlane.f32.xlu0 %v345_v12  ;;  %v351_v14 = vmul.f32 %v345_v12, %v345_v12 }
  0xc9   : > { %v346_v13 = vpop.f32.mrf.mxu0 }
  0xcc   : > { %352 = vadd.xlane.f32.xlu0 %v351_v14 }
 0x137   : > { %v349_v21 = vpop.xlane.xlu0 %348 }
 0x138   : > { %v350_v23 = vmul.f32 0.03125, %v349_v21 }
 0x13a   : > { %v355_v26 = vmul.f32 %v350_v23, %v350_v23  ;;  %v357_v36 = vsub.f32 %v345_v12, %v350_v23 }
 0x13f   : > { %v353_v25 = vpop.xlane.xlu0 %352 }
 0x140   : > { %v354_v27 = vmul.f32 0.03125, %v353_v25  ;;  %v570_v25 = vperm.slane %v1994_v9, 3 }
 0x142   : > { %v356_v28 = vsub.f32 %v354_v27, %v355_v26 }
 0x144   : > { %v358_v29 = vadd.f32 1e-05, %v356_v28 }
 0x146   : > { %1692 = vrsqrt.f32 %v358_v29  ;;  %vm365_vm1 = vweird.f32 %v358_v29 }
 0x14c   : > { %v1693_v30 = vpop.eup %1692 }
 0x14d   : > { %v360_v31 = vmul.f32 %v1693_v30, %v358_v29  ;;  %vm366_vm0 = vweird.f32 %v1693_v30 }
 0x14e   : > { %vm367_vm2 = vmor %vm365_vm1, %vm366_vm0 }
 0x14f   : > { %v361_v32 = vmul.f32 %v1693_v30, %v360_v31  ;;  %v1583_v31 = vld [vmem:[#allocation5 + $0x170] sm:$0xff] }
 0x151   : > { %v362_v33 = vmul.f32 0.5, %v361_v32  ;;  %v1582_v32 = vld [vmem:[#allocation5 + $0x168] sm:$0xff] }
 0x153   : > { %v363_v34 = vsub.f32 1.5, %v362_v33  ;;  %v1581_v33 = vld [vmem:[#allocation5 + $0x160] sm:$0xff] }
 0x155   : > { %v364_v35 = vmul.f32 %v1693_v30, %v363_v34  ;;  %v1580_v34 = vld [vmem:[#allocation5 + $0x158] sm:$0xff] }
 0x157   : > { %v368_v38 = vsel %vm367_vm2, %v1693_v30, %v364_v35  ;;  %v1584_v30 = vld [vmem:[#allocation5 + $0x178] sm:$0xff]  ;;  %v1579_v35 = vld [vmem:[#allocation5 + $0x150] sm:$0xff] }
 0x158   : > { %v369_v39 = vmul.f32 %v368_v38, %v357_v36  ;;  %728 = vmatpush.bf16.msrb.mxu0 %v1584_v30  ;;  %v1594_v30 = vld [vmem:[#allocation5 + $0x88] sm:$0xff] }
 0x15a   : > { %v371_v41 = vmul.f32 %v370_v37, %v369_v39  ;;  %v1578_v37 = vld [vmem:[#allocation5 + $0x148] sm:$0xff]  ;;  %v1577_v39 = vld [vmem:[#allocation5 + $0x140] sm:$0xff] }
 0x15c   : > { %v373_v42 = vadd.f32 %v372_v40, %v371_v41  ;;  %729 = vmatpush.bf16.msrb.mxu0 %v1583_v31  ;;  %v1593_v31 = vld [vmem:[#allocation5 + $0x80] sm:$0xff] }
 0x15e   : > { %vm374_vm3 = vcmp.gt.f32.partialorder %v373_v42, 0.0  ;;  %v375_v43 = vmul.f32 0.01, %v373_v42 }
 0x160   : > { %v1999_v44 = vsel %vm374_vm3, %v373_v42, %v375_v43  ;;  %730 = vmatpush.bf16.msrb.mxu0 %v1582_v32  ;;  %v770_v32 = vperm.slane %v2011_v53, 4 }
 0x161   : > { %v377_v45 = vpack.c.bf16 %v1999_v44, %v1999_v44 }
 0x163   : > { %452 = vmatmul.bf16.vlgmr.msra.gmra.mxu1 %v377_v45 }
 0x164   : > { %731 = vmatpush.bf16.msrb.mxu0 %v1581_v33 }
 0x168   : > { %732 = vmatpush.bf16.msrb.mxu0 %v1580_v34 }
 0x16c   : > { %733 = vmatpush.bf16.msrb.mxu0 %v1579_v35 }
 0x170   : > { %734 = vmatpush.bf16.msrb.mxu0 %v1578_v37 }
 0x174   : > { %735 = vmatpush.bf16.msrb.mxu0 %v1577_v39 }
 0x1e0   : > { %v453_v58 = vpop.f32.mrf.mxu1 }
 0x1e1   : > { %v454_v59 = vadd.f32 %v453_v58, %v395_v56 }
 0x1e3   : > { %v458_v61 = vadd.f32 %v457_v57, %v454_v59  ;;  %v656_v57 = vperm.slane %v1994_v9, 5 }
 0x1e5   : > { %v459_v63 = vmax.f32 %v458_v61, -30.0 }
 0x1e7   : > { %v460_v0 = vsub.f32 0.0, %v459_v63  ;;  %v1592_v63 = vld [vmem:[#allocation5 + $0x1b8] sm:$0xff] }
 0x1e8   : > { %v455_v2 = vpop.f32.mrf.mxu1  ;;  %819 = vmatpush.bf16.msrb.mxu1 %v1592_v63 }
 0x1e9   : > { %v461_v3 = vmul.f32 1.442695, %v460_v0  ;;  %v1591_v0 = vld [vmem:[#allocation5 + $0x1b0] sm:$0xff]  ;;  %v1589_v2 = vld [vmem:[#allocation5 + $0x1a0] sm:$0xff] }
 0x1eb   : > { %1694 = vpow2.f32 %v461_v3  ;;  %v1588_v3 = vld [vmem:[#allocation5 + $0x198] sm:$0xff] }
 0x1ec   : > { %820 = vmatpush.bf16.msrb.mxu1 %v1591_v0 }
 0x1f0   : > { %821 = vmatpush.bf16.msrb.mxu1 %v1590_v1 }
 0x1f1   : > { %v1695_v6 = vpop.eup %1694 }
 0x1f2   : > { %v464_v7 = vmul.f32 %v1695_v6, %v1695_v6  ;;  %v463_v11 = vsub.f32 1.0, %v1695_v6  ;;  %v1585_v6 = vld [vmem:[#allocation5 + $0x180] sm:$0xff] }
 0x1f4   : > { %v465_v10 = vadd.f32 1.0, %v464_v7  ;;  %822 = vmatpush.bf16.msrb.mxu1 %v1589_v2  ;;  %v679_v7 = vperm.slane %v2011_v53, 3 }
 0x1f6   : > { %1696 = vrcp.f32 %v465_v10 }
 0x1f8   : > { %823 = vmatpush.bf16.msrb.mxu1 %v1588_v3 }
 0x1fc   : > { %v1697_v12 = vpop.eup %1696  ;;  %824 = vmatpush.bf16.msrb.mxu1 %v1587_v4 }
 0x1fd   : > { %v467_v13 = vmul.f32 %v1697_v12, %v463_v11  ;;  %v1600_v12 = vld [vmem:[#allocation5 + $0xb8] sm:$0xff] }
 0x1fe   : > { %903 = vmatpush.bf16.msrb.mxu2 %v1600_v12 }
 0x1ff   : > { %v468_v14 = vpack.c.bf16 %v467_v13, %v467_v13 }
 0x200   : > { %825 = vmatpush.bf16.msrb.mxu1 %v1586_v5  ;;  %v938_v5 = vperm.slane %v1994_v9, 7 }
 0x201   : > { %543 = vmatmul.bf16.vlgmr.msra.gmra.mxu2 %v468_v14  ;;  %v1599_v14 = vld [vmem:[#allocation5 + $0xb0] sm:$0xff] }
 0x202   : > { %904 = vmatpush.bf16.msrb.mxu2 %v1599_v14 }
 0x204   : > { %826 = vmatpush.bf16.msrb.mxu1 %v1585_v6 }
 0x284   : > { %v544_v18 = vpop.f32.mrf.mxu2 }
 0x285   : > { %v545_v19 = vadd.f32 %v544_v18, %v486_v17  ;;  %v1598_v17 = vld [vmem:[#allocation5 + $0xa8] sm:$0xff] }
 0x286   : > { %905 = vmatpush.bf16.msrb.mxu2 %v1598_v17  ;;  %v1614_v17 = vld [vmem:[#allocation5 + $0x228] sm:$0xff] }
 0x287   : > { %v548_v20 = vadd.f32 %v545_v19, %v1999_v44 }
 0x289   : > { %vm549_vm4 = vcmp.gt.f32.partialorder %v548_v20, 0.0  ;;  %v550_v21 = vmul.f32 0.2, %v548_v20 }
 0x28b   : > { %v551_v22 = vsel %vm549_vm4, %v548_v20, %v550_v21  ;;  %v1597_v20 = vld [vmem:[#allocation5 + $0xa0] sm:$0xff]  ;;  %v1596_v21 = vld [vmem:[#allocation5 + $0x98] sm:$0xff] }
 0x28c   : > { %v546_v23 = vpop.f32.mrf.mxu2  ;;  %v552_v24 = vpack.c.bf16 %v551_v22, %v551_v22  ;;  %906 = vmatpush.bf16.msrb.mxu2 %v1597_v20  ;;  %v1610_v20 = vld [vmem:[#allocation5 + $0x208] sm:$0xff] }
 0x28e   : > { %627 = vmatmul.bf16.vlgmr.msra.gmra.mxu3 %v552_v24  ;;  %v1595_v24 = vld [vmem:[#allocation5 + $0x90] sm:$0xff] }
 0x290   : > { %907 = vmatpush.bf16.msrb.mxu2 %v1596_v21  ;;  %v1609_v21 = vld [vmem:[#allocation5 + $0x200] sm:$0xff] }
 0x294   : > { %908 = vmatpush.bf16.msrb.mxu2 %v1595_v24 }
 0x298   : > { %909 = vmatpush.bf16.msrb.mxu2 %v1594_v30 }
 0x29c   : > { %910 = vmatpush.bf16.msrb.mxu2 %v1593_v31 }
 0x311   : > { %v628_v26 = vpop.f32.mrf.mxu3 }
 0x312   : > { %v629_v27 = vadd.f32 %v628_v26, %v570_v25 }
 0x314   : > { %632 = vadd.xlane.f32.xlu1 %v629_v27  ;;  %v635_v29 = vmul.f32 %v629_v27, %v629_v27 }
 0x319   : > { %v630_v28 = vpop.f32.mrf.mxu3 }
 0x31c   : > { %636 = vadd.xlane.f32.xlu1 %v635_v29 }
 0x387   : > { %v633_v36 = vpop.xlane.xlu1 %632 }
 0x388   : > { %v634_v38 = vmul.f32 0.03125, %v633_v36 }
 0x38a   : > { %v639_v41 = vmul.f32 %v634_v38, %v634_v38  ;;  %v641_v51 = vsub.f32 %v629_v27, %v634_v38 }
 0x38f   : > { %v637_v40 = vpop.xlane.xlu1 %636 }
 0x390   : > { %v638_v42 = vmul.f32 0.03125, %v637_v40  ;;  %v854_v40 = vperm.slane %v1994_v9, 6  ;;  %v1612_v9 = vld [vmem:[#allocation5 + $0x218] sm:$0xff] }
 0x392   : > { %v640_v43 = vsub.f32 %v638_v42, %v639_v41 }
 0x394   : > { %v642_v44 = vadd.f32 1e-05, %v640_v43 }
 0x396   : > { %1698 = vrsqrt.f32 %v642_v44  ;;  %vm649_vm6 = vweird.f32 %v642_v44 }
 0x39c   : > { %v1699_v45 = vpop.eup %1698 }
 0x39d   : > { %v644_v46 = vmul.f32 %v1699_v45, %v642_v44  ;;  %vm650_vm5 = vweird.f32 %v1699_v45 }
 0x39e   : > { %vm651_vm7 = vmor %vm649_vm6, %vm650_vm5 }
 0x39f   : > { %v645_v47 = vmul.f32 %v1699_v45, %v644_v46  ;;  %v1607_v46 = vld [vmem:[#allocation5 + $0x1f0] sm:$0xff] }
 0x3a1   : > { %v646_v48 = vmul.f32 0.5, %v645_v47  ;;  %v1606_v47 = vld [vmem:[#allocation5 + $0x1e8] sm:$0xff] }
 0x3a3   : > { %v647_v49 = vsub.f32 1.5, %v646_v48  ;;  %v1605_v48 = vld [vmem:[#allocation5 + $0x1e0] sm:$0xff] }
 0x3a5   : > { %v648_v50 = vmul.f32 %v1699_v45, %v647_v49  ;;  %v1604_v49 = vld [vmem:[#allocation5 + $0x1d8] sm:$0xff] }
 0x3a7   : > { %v652_v54 = vsel %vm651_vm7, %v1699_v45, %v648_v50  ;;  %v1608_v45 = vld [vmem:[#allocation5 + $0x1f8] sm:$0xff]  ;;  %v1603_v50 = vld [vmem:[#allocation5 + $0x1d0] sm:$0xff] }
 0x3a8   : > { %v653_v56 = vmul.f32 %v652_v54, %v641_v51  ;;  %1012 = vmatpush.bf16.msrb.mxu3 %v1608_v45 }
 0x3aa   : > { %v655_v58 = vmul.f32 %v654_v52, %v653_v56  ;;  %v1602_v52 = vld [vmem:[#allocation5 + $0x1c8] sm:$0xff]  ;;  %v1601_v56 = vld [vmem:[#allocation5 + $0x1c0] sm:$0xff] }
 0x3ac   : > { %v657_v59 = vadd.f32 %v656_v57, %v655_v58  ;;  %1013 = vmatpush.bf16.msrb.mxu3 %v1607_v46 }
 0x3ae   : > { %vm658_vm8 = vcmp.gt.f32.partialorder %v657_v59, 0.0  ;;  %v659_v60 = vmul.f32 0.01, %v657_v59 }
 0x3b0   : > { %v660_v61 = vsel %vm658_vm8, %v657_v59, %v659_v60  ;;  %1014 = vmatpush.bf16.msrb.mxu3 %v1606_v47 }
 0x3b1   : > { %v661_v62 = vpack.c.bf16 %v660_v61, %v660_v61 }
 0x3b3   : > { %736 = vmatmul.bf16.vlgmr.msrb.gmra.mxu0 %v661_v62 }
 0x3b4   : > { %1015 = vmatpush.bf16.msrb.mxu3 %v1605_v48 }
 0x3b8   : > { %1016 = vmatpush.bf16.msrb.mxu3 %v1604_v49 }
 0x3bc   : > { %1017 = vmatpush.bf16.msrb.mxu3 %v1603_v50 }
 0x3c0   : > { %1018 = vmatpush.bf16.msrb.mxu3 %v1602_v52 }
 0x3c4   : > { %1019 = vmatpush.bf16.msrb.mxu3 %v1601_v56 }
 0x430   : > { %v737_v10 = vpop.f32.mrf.mxu0 }
 0x431   : > { %v738_v11 = vadd.f32 %v737_v10, %v679_v7 }
 0x433   : > { %v742_v13 = vadd.f32 %v741_v8, %v738_v11  ;;  %v940_v8 = vperm.slane %v2011_v53, 0 }
 0x435   : > { %v743_v15 = vmax.f32 %v742_v13, -30.0 }
 0x437   : > { %v744_v16 = vsub.f32 0.0, %v743_v15  ;;  %v1616_v15 = vld [vmem:[#allocation5 + $0x238] sm:$0xff] }
 0x438   : > { %v739_v18 = vpop.f32.mrf.mxu0  ;;  %1103 = vmatpush.bf16.msra.mxu0 %v1616_v15 }
 0x439   : > { %v745_v19 = vmul.f32 1.442695, %v744_v16  ;;  %v1615_v16 = vld [vmem:[#allocation5 + $0x230] sm:$0xff]  ;;  %v1613_v18 = vld [vmem:[#allocation5 + $0x220] sm:$0xff] }
 0x43b   : > { %1700 = vpow2.f32 %v745_v19  ;;  %v1611_v19 = vld [vmem:[#allocation5 + $0x210] sm:$0xff] }
 0x43c   : > { %1104 = vmatpush.bf16.msra.mxu0 %v1615_v16 }
 0x440   : > { %1105 = vmatpush.bf16.msra.mxu0 %v1614_v17 }
 0x441   : > { %v1701_v22 = vpop.eup %1700 }
 0x442   : > { %v748_v23 = vmul.f32 %v1701_v22, %v1701_v22  ;;  %v747_v26 = vsub.f32 1.0, %v1701_v22  ;;  %v963_v22 = vperm.slane %v2011_v53, 5 }
 0x444   : > { %v749_v25 = vadd.f32 1.0, %v748_v23  ;;  %1106 = vmatpush.bf16.msra.mxu0 %v1613_v18  ;;  %v1025_v23 = vperm.slane %v2013_v55, 2  ;;  %v1054_v55 = vperm.slane %v2011_v53, 6 }
 0x446   : > { %1702 = vrcp.f32 %v749_v25 }
 0x448   : > { %1107 = vmatpush.bf16.msra.mxu0 %v1612_v9 }
 0x44c   : > { %v1703_v27 = vpop.eup %1702  ;;  %1108 = vmatpush.bf16.msra.mxu0 %v1611_v19 }
 0x44d   : > { %v751_v28 = vmul.f32 %v1703_v27, %v747_v26 }
 0x44f   : > { %v752_v29 = vpack.c.bf16 %v751_v28, %v751_v28 }
 0x450   : > { %1109 = vmatpush.bf16.msra.mxu0 %v1610_v20 }
 0x451   : > { %827 = vmatmul.bf16.vlgmr.msrb.gmra.mxu1 %v752_v29 }
 0x454   : > { %1110 = vmatpush.bf16.msra.mxu0 %v1609_v21 }
 0x4ce   : > { %v828_v33 = vpop.f32.mrf.mxu1 }
 0x4cf   : > { %v829_v34 = vadd.f32 %v828_v33, %v770_v32 }
 0x4d1   : > { %v832_v35 = vadd.f32 %v829_v34, %v660_v61 }
 0x4d3   : > { %v834_v36 = vmul.f32 0.2, %v832_v35  ;;  %vm833_vm9 = vcmp.gt.f32.partialorder %v832_v35, 0.0 }
 0x4d5   : > { %v835_v37 = vsel %vm833_vm9, %v832_v35, %v834_v36 }
 0x4d6   : > { %v830_v38 = vpop.f32.mrf.mxu1  ;;  %v836_v39 = vpack.c.bf16 %v835_v37, %v835_v37 }
 0x4d8   : > { %911 = vmatmul.bf16.vlgmr.msrb.gmra.mxu2 %v836_v39 }
 0x55b   : > { %v912_v41 = vpop.f32.mrf.mxu2 }
 0x55c   : > { %v913_v42 = vadd.f32 %v912_v41, %v854_v40 }
 0x55e   : > { %916 = vadd.xlane.f32.xlu2 %v913_v42  ;;  %v919_v44 = vmul.f32 %v913_v42, %v913_v42 }
 0x563   : > { %v914_v43 = vpop.f32.mrf.mxu2 }
 0x566   : > { %920 = vadd.xlane.f32.xlu2 %v919_v44 }
 0x5d1   : > { %v917_v51 = vpop.xlane.xlu2 %916 }
 0x5d2   : > { %v918_v54 = vmul.f32 0.03125, %v917_v51 }
 0x5d4   : > { %v923_v58 = vmul.f32 %v918_v54, %v918_v54  ;;  %v925_v4 = vsub.f32 %v913_v42, %v918_v54 }
 0x5d9   : > { %v921_v57 = vpop.xlane.xlu2 %920 }
 0x5da   : > { %v922_v59 = vmul.f32 0.03125, %v921_v57 }
 0x5dc   : > { %v924_v60 = vsub.f32 %v922_v59, %v923_v58 }
 0x5de   : > { %v926_v61 = vadd.f32 1e-05, %v924_v60 }
 0x5e0   : > { %1704 = vrsqrt.f32 %v926_v61  ;;  %vm933_vm11 = vweird.f32 %v926_v61 }
 0x5e6   : > { %v1705_v62 = vpop.eup %1704 }
 0x5e7   : > { %v928_v63 = vmul.f32 %v1705_v62, %v926_v61  ;;  %vm934_vm10 = vweird.f32 %v1705_v62 }
 0x5e8   : > { %vm935_vm12 = vmor %vm933_vm11, %vm934_vm10 }
 0x5e9   : > { %v929_v0 = vmul.f32 %v1705_v62, %v928_v63 }
 0x5eb   : > { %v930_v1 = vmul.f32 0.5, %v929_v0 }
 0x5ed   : > { %v931_v2 = vsub.f32 1.5, %v930_v1 }
 0x5ef   : > { %v932_v3 = vmul.f32 %v1705_v62, %v931_v2 }
 0x5f1   : > { %v936_v6 = vsel %vm935_vm12, %v1705_v62, %v932_v3 }
 0x5f2   : > { %v937_v7 = vmul.f32 %v936_v6, %v925_v4 }
 0x5f4   : > { %v939_v10 = vmul.f32 %v938_v5, %v937_v7 }
 0x5f6   : > { %v941_v11 = vadd.f32 %v940_v8, %v939_v10 }
 0x5f8   : > { %vm942_vm13 = vcmp.gt.f32.partialorder %v941_v11, 0.0  ;;  %v943_v12 = vmul.f32 0.01, %v941_v11 }
 0x5fa   : > { %v944_v13 = vsel %vm942_vm13, %v941_v11, %v943_v12 }
 0x5fb   : > { %v945_v14 = vpack.c.bf16 %v944_v13, %v944_v13 }
 0x5fd   : > { %1020 = vmatmul.bf16.vlgmr.msrb.gmra.mxu3 %v945_v14 }
 0x680   : > { %v1021_v24 = vpop.f32.mrf.mxu3 }
 0x681   : > { %v1022_v25 = vadd.f32 %v1021_v24, %v963_v22 }
 0x683   : > { %v1026_v26 = vadd.f32 %v1025_v23, %v1022_v25 }
 0x685   : > { %v1027_v27 = vmax.f32 %v1026_v26, -30.0 }
 0x687   : > { %v1028_v28 = vsub.f32 0.0, %v1027_v27 }
 0x688   : > { %v1023_v29 = vpop.f32.mrf.mxu3 }
 0x689   : > { %v1029_v30 = vmul.f32 1.442695, %v1028_v28 }
 0x68b   : > { %1706 = vpow2.f32 %v1029_v30 }
 0x691   : > { %v1707_v31 = vpop.eup %1706 }
 0x692   : > { %v1032_v32 = vmul.f32 %v1707_v31, %v1707_v31  ;;  %v1031_v34 = vsub.f32 1.0, %v1707_v31 }
 0x694   : > { %v1033_v33 = vadd.f32 1.0, %v1032_v32 }
 0x696   : > { %1708 = vrcp.f32 %v1033_v33 }
 0x69c   : > { %v1709_v35 = vpop.eup %1708 }
 0x69d   : > { %v1035_v36 = vmul.f32 %v1709_v35, %v1031_v34 }
 0x69f   : > { %v1036_v37 = vpack.c.bf16 %v1035_v36, %v1035_v36 }
 0x6a1   : > { %1111 = vmatmul.bf16.vlgmr.msra.gmra.mxu0 %v1036_v37 }
 0x71e   : > { %v1112_v38 = vpop.f32.mrf.mxu0 }
 0x71f   : > { %v1113_v39 = vadd.f32 %v1112_v38, %v1054_v55 }
 0x721   : > { %v1116_v40 = vadd.f32 %v1113_v39, %v944_v13 }
 0x723   : > { %vm1117_vm14 = vcmp.gt.f32.partialorder %v1116_v40, 0.0  ;;  %v1118_v41 = vmul.f32 0.2, %v1116_v40 }
 0x725   : > { %v1119_v53 = vsel %vm1117_vm14, %v1116_v40, %v1118_v41 }
 0x726   : > { %v1114_v42 = vpop.f32.mrf.mxu0  ;;  %1121 = vst.msk [vmem:[%s261_s23] sm:$0xff] %vm1120_vm15, %v1119_v53 }
 0x727   : > { %1797 = shalt.err (!%p1794_p0)
}
 0x728   : > { %1623 = dma.vmem_to_hbm [thread:$0]  (%p1957_p4), %s1137_s22, 128, %s1139_s26, %s1123_s18  }
 0x729 PF: > { %s1150_s7 = sand.u32 1, %s1836_s15   ;;  %p1634_p2 = pnand %p1245_p6, %p1965_p7 }
 0x72a   : > { %s1151_s29 = scalar_lea.sflag [#allocation4], %s1150_s7 }
 0x72b   : > { %p1635_p5 = pneg %p1634_p2 }
 0x72d   : > { %1831 = dma.done.wait (%p1635_p5), %s1151_s29, 128  }
 0x72e   : > { %1833 = vsyncadd (%p1635_p5), %s1151_s29, 4294967168  ;;  %s21_s20 = sadd.s32 1, %s1856_s20   ;;  %s2081_s15 = smov %s1840_s16 }
 0x72f   : > { %p18_p8 = scmp.ge.s32.totalorder %s21_s20, 4   ;;  %s2082_s16 = smov %s1844_s17 }
 0x730   : > { %s2083_s17 = smov %s1963_s12  ;;  %s2084_s18 = smov %s1852_s19 }
 0x731   : > { %s2085_s19 = smov %s2087_s6  ;;  %20 = sbr.rel (!%p18_p8) target bundleno = 7 (0x7), region = 96 }
 0x736   :  { %1157 = vsyncpa [#allocation3], 1 }
 0x737   :  { %1159 = vsyncpa [#allocation3 + $0x1], 1 }
 0x738   :  { %1160 = vsyncpa [#allocation6], 1 }
 0x739   :  { %1161 = vsyncpa [#allocation4], 1 }
 0x73a   :  { %1163 = vsyncpa [#allocation4 + $0x1], 1 }

</bundles_post_ra>
